<compile_context>
chip_gen: v7x
topology: tpu7x:2x2x1
jax: 0.10.0
libtpu: 0.0.40
codegen_flags: <defaults>
</compile_context>

<pallas_src>
import functools
import math

import jax
import jax.numpy as jnp
from jax import lax
from jax.experimental import pallas as pl
from jax.experimental.pallas import tpu as pltpu


_FUSED_OUT = 8          # rows: [cx, cy, cz, qw, qx, qy, qz, pad]
_EPS = 1e-12            # F.normalize default eps


def _decoder_kernel(x_ref, w_ref, b_ref, out_ref):
    x = x_ref[...]                     # (tm, D)  native dtype
    w = w_ref[...]                     # (8,  D)  compute dtype (bf16 or f32)
    if x.dtype != w.dtype:             # trace-time branch (e.g. f16/int inputs)
        x = x.astype(w.dtype)

    # Lane-dense fused head on the MXU: contract D with D -> (8, tm), f32 acc.
    y = lax.dot_general(w, x, dimension_numbers=(((1,), (1,)), ((), ())),
                        preferred_element_type=jnp.float32)
    y = y + b_ref[...]                 # (8, tm) + (8, 1)

    coords = y[0:3, :]                           # (3, tm)
    qw = jnp.maximum(y[3:4, :], 0.0)             # relu on quaternion w
    qxyz = y[4:7, :]                             # (3, tm)

    # ||q||^2 per column; rsqrt(max(., eps^2)) == 1 / max(||q||, eps).
    sumsq = qw * qw + jnp.sum(qxyz * qxyz, axis=0, keepdims=True)   # (1, tm)
    inv_norm = lax.rsqrt(jnp.maximum(sumsq, _EPS * _EPS))           # EUP path

    dt = out_ref.dtype
    out_ref[0:3, :] = coords.astype(dt)
    out_ref[3:4, :] = (qw * inv_norm).astype(dt)
    out_ref[4:7, :] = (qxyz * inv_norm).astype(dt)
    out_ref[7:8, :] = jnp.zeros((1, out_ref.shape[1]), dt)          # pad row


def _round_up(a, m):
    return ((a + m - 1) // m) * m


@functools.partial(jax.jit, static_argnames=("target_tile_bytes",))
def vo_pose_constrain_quaternion_decoder(x, w_coord, b_coord, w_ang, b_ang,
                                         *, target_tile_bytes=4 * 2 ** 20):
    """x: (..., input_dim). Returns (coords (...,3), quat (...,4))."""
    lead = x.shape[:-1]
    d = x.shape[-1]
    n = math.prod(lead)

    x2 = x.reshape(n, d)               # native dtype in HBM; no up-cast, no pad

    # MXU takes bf16 natively (f32 accumulate); otherwise compute in f32.
    compute_dtype = jnp.bfloat16 if x.dtype == jnp.bfloat16 else jnp.float32

    # Fused weight [Wc ; Wa ; 0] -> (8, D): matches nn.Linear (out, in) layout,
    # so no wrapper transposes.  Fused bias -> (8, 1) in f32.
    w_fused = jnp.concatenate(
        [w_coord.astype(compute_dtype),
         w_ang.astype(compute_dtype),
         jnp.zeros((1, d), compute_dtype)], axis=0)
    b_fused = jnp.concatenate(
        [b_coord.reshape(-1).astype(jnp.float32),
         b_ang.reshape(-1).astype(jnp.float32),
         jnp.zeros((1,), jnp.float32)]).reshape(_FUSED_OUT, 1)

    # Row tile from a byte budget (rows map to the lane axis of the output).
    x_bytes = x.dtype.itemsize
    if n <= 128:
        tm = n                                            # single full-extent block
    else:
        tm = max(128, (target_tile_bytes // (d * x_bytes)) // 128 * 128)
        # keep >= 2 grid steps when possible so v7x's two TCs both get work
        tm = min(tm, max(128, _round_up(pl.cdiv(n, 2), 128)))
        tm = min(tm, _round_up(n, 128))
    grid = (pl.cdiv(n, tm),)                              # ragged last block OK

    w_bytes = jnp.dtype(compute_dtype).itemsize
    vmem_needed = 2 * (tm * d * x_bytes + _FUSED_OUT * tm * x_bytes
                       + _FUSED_OUT * d * w_bytes + _FUSED_OUT * 4)
    vmem_limit = int(min(48 * 2 ** 20, max(2 * vmem_needed, 16 * 2 ** 20)))

    cost = pl.CostEstimate(
        flops=2 * n * d * _FUSED_OUT,
        transcendentals=n,
        bytes_accessed=(n * d * x_bytes + _FUSED_OUT * n * x_bytes
                        + _FUSED_OUT * d * w_bytes + _FUSED_OUT * 4))

    out = pl.pallas_call(
        _decoder_kernel,
        out_shape=jax.ShapeDtypeStruct((_FUSED_OUT, n), x.dtype),
        grid_spec=pltpu.PrefetchScalarGridSpec(
            num_scalar_prefetch=0,
            grid=grid,
            in_specs=[
                pl.BlockSpec((tm, d), lambda i: (i, 0)),            # x rows
                pl.BlockSpec((_FUSED_OUT, d), lambda i: (0, 0)),    # fused W
                pl.BlockSpec((_FUSED_OUT, 1), lambda i: (0, 0)),    # fused b
            ],
            out_specs=pl.BlockSpec((_FUSED_OUT, tm), lambda i: (0, i)),
        ),
        compiler_params=pltpu.CompilerParams(
            dimension_semantics=("parallel",),
            vmem_limit_bytes=vmem_limit),
        cost_estimate=cost,
    )(x2, w_fused, b_fused)

    # Cheap split / transpose of the tiny (8, n) result in plain JAX.
    coords = out[0:3, :].T.reshape(*lead, 3)
    quat = out[3:7, :].T.reshape(*lead, 4)
    return coords, quat


def _reference(x, w_coord, b_coord, w_ang, b_ang):
    coords = x @ w_coord.T + b_coord
    angles = x @ w_ang.T + b_ang
    qw = jnp.maximum(angles[..., :1], 0.0)
    q = jnp.concatenate([qw, angles[..., 1:]], axis=-1)
    denom = jnp.maximum(jnp.linalg.norm(q, axis=-1, keepdims=True), 1e-12)
    return coords, q / denom


if __name__ == "__main__":
    batch, seq, input_dim = 2, 8, 32

    key = jax.random.PRNGKey(0)
    kx, kwc, kbc, kwa, kba = jax.random.split(key, 5)

    # Deterministic synthetic parameters (nn.Linear shapes: (out, in) + (out,)).
    x = jax.random.normal(kx, (batch, seq, input_dim), dtype=jnp.float32)
    bound = 1.0 / (input_dim ** 0.5)
    w_coord = jax.random.uniform(kwc, (3, input_dim), minval=-bound, maxval=bound)
    b_coord = jax.random.uniform(kbc, (3,), minval=-bound, maxval=bound)
    w_ang = jax.random.uniform(kwa, (4, input_dim), minval=-bound, maxval=bound)
    b_ang = jax.random.uniform(kba, (4,), minval=-bound, maxval=bound)

    coords, quat = vo_pose_constrain_quaternion_decoder(
        x, w_coord, b_coord, w_ang, b_ang)
    jax.block_until_ready((coords, quat))

    ref_coords, ref_quat = _reference(x, w_coord, b_coord, w_ang, b_ang)
    assert coords.shape == (batch, seq, 3) and quat.shape == (batch, seq, 4)
    assert jnp.allclose(coords, ref_coords, atol=1e-5, rtol=1e-5)
    assert jnp.allclose(quat, ref_quat, atol=1e-5, rtol=1e-5)

    print("KERNEL_OK")
</pallas_src>

<mosaic_0001>
module attributes {stable_mosaic.version = 11 : i64} {
  func.func @_decoder_kernel(%arg0: i32, %arg1: memref<16x32xf32, #tpu.memory_space<vmem>>, %arg2: memref<8x32xf32, #tpu.memory_space<vmem>>, %arg3: memref<8x1xf32, #tpu.memory_space<vmem>>, %arg4: memref<8x16xf32, #tpu.memory_space<vmem>>) attributes {dimension_semantics = [#tpu.dimension_semantics<parallel>], iteration_bounds = array<i64: 1>, scalar_prefetch = 0 : i64, scratch_operands = 0 : i64, tpu.core_type = #tpu.core_type<tc>, window_params = [{transform_indices = @transform_0, window_bounds = array<i64: 16, 32>}, {pipeline_mode = #tpu.pipeline_mode<synchronous>, transform_indices = @transform_1, window_bounds = array<i64: 8, 32>}, {pipeline_mode = #tpu.pipeline_mode<synchronous>, transform_indices = @transform_2, window_bounds = array<i64: 8, 1>}, {transform_indices = @transform_3, window_bounds = array<i64: 8, 16>}]} {
    %c0 = arith.constant 0 : index
    %c0_0 = arith.constant 0 : index
    %0 = vector.load %arg1[%c0, %c0_0] : memref<16x32xf32, #tpu.memory_space<vmem>>, vector<16x32xf32>
    %c0_1 = arith.constant 0 : index
    %c0_2 = arith.constant 0 : index
    %1 = vector.load %arg2[%c0_1, %c0_2] : memref<8x32xf32, #tpu.memory_space<vmem>>, vector<8x32xf32>
    %cst = arith.constant dense<0.000000e+00> : vector<8x16xf32>
    %2 = tpu.matmul %1, %0, %cst {dimension_numbers = #tpu.dot_dimension_numbers<[1], [1], [0], [0], [0, 0, 1, 0], [], []>} : vector<8x32xf32>, vector<16x32xf32>, vector<8x16xf32> -> vector<8x16xf32>
    %c0_3 = arith.constant 0 : index
    %c0_4 = arith.constant 0 : index
    %3 = vector.load %arg3[%c0_3, %c0_4] : memref<8x1xf32, #tpu.memory_space<vmem>>, vector<8x1xf32>
    %4 = vector.broadcast %3 : vector<8x1xf32> to vector<8x16xf32>
    %5 = arith.addf %2, %4 : vector<8x16xf32>
    %6 = vector.extract_strided_slice %5 {offsets = [0, 0], sizes = [3, 16], strides = [1, 1]} : vector<8x16xf32> to vector<3x16xf32>
    %7 = vector.extract_strided_slice %5 {offsets = [3, 0], sizes = [1, 16], strides = [1, 1]} : vector<8x16xf32> to vector<1x16xf32>
    %cst_5 = arith.constant 0.000000e+00 : f32
    %8 = vector.broadcast %cst_5 : f32 to vector<1x16xf32>
    %9 = arith.maximumf %7, %8 : vector<1x16xf32>
    %10 = vector.extract_strided_slice %5 {offsets = [4, 0], sizes = [3, 16], strides = [1, 1]} : vector<8x16xf32> to vector<3x16xf32>
    %11 = arith.mulf %9, %9 : vector<1x16xf32>
    %12 = arith.mulf %10, %10 : vector<3x16xf32>
    %cst_6 = arith.constant dense<0.000000e+00> : vector<16xf32>
    %13 = vector.multi_reduction <add>, %12, %cst_6 [0] : vector<3x16xf32> to vector<16xf32>
    %14 = vector.shape_cast %13 : vector<16xf32> to vector<1x16xf32>
    %15 = arith.addf %11, %14 : vector<1x16xf32>
    %cst_7 = arith.constant 1.000000e-24 : f32
    %16 = vector.broadcast %cst_7 : f32 to vector<1x16xf32>
    %17 = arith.maximumf %15, %16 : vector<1x16xf32>
    %18 = math.rsqrt %17 : vector<1x16xf32>
    %c0_8 = arith.constant 0 : index
    %c0_9 = arith.constant 0 : index
    %19 = vector.load %arg4[%c0_8, %c0_9] : memref<8x16xf32, #tpu.memory_space<vmem>>, vector<3x16xf32>
    tpu.vector_store %arg4[%c0_8, %c0_9], %6 {strides = array<i32>} : memref<8x16xf32, #tpu.memory_space<vmem>>, vector<3x16xf32>,
    %20 = arith.mulf %9, %18 : vector<1x16xf32>
    %c3 = arith.constant 3 : index
    %c0_10 = arith.constant 0 : index
    %21 = vector.load %arg4[%c3, %c0_10] : memref<8x16xf32, #tpu.memory_space<vmem>>, vector<1x16xf32>
    tpu.vector_store %arg4[%c3, %c0_10], %20 {strides = array<i32>} : memref<8x16xf32, #tpu.memory_space<vmem>>, vector<1x16xf32>,
    %22 = vector.broadcast %18 : vector<1x16xf32> to vector<3x16xf32>
    %23 = arith.mulf %10, %22 : vector<3x16xf32>
    %c4 = arith.constant 4 : index
    %c0_11 = arith.constant 0 : index
    %24 = vector.load %arg4[%c4, %c0_11] : memref<8x16xf32, #tpu.memory_space<vmem>>, vector<3x16xf32>
    tpu.vector_store %arg4[%c4, %c0_11], %23 {strides = array<i32>} : memref<8x16xf32, #tpu.memory_space<vmem>>, vector<3x16xf32>,
    %cst_12 = arith.constant 0.000000e+00 : f32
    %25 = vector.broadcast %cst_12 : f32 to vector<1x16xf32>
    %c7 = arith.constant 7 : index
    %c0_13 = arith.constant 0 : index
    %26 = vector.load %arg4[%c7, %c0_13] : memref<8x16xf32, #tpu.memory_space<vmem>>, vector<1x16xf32>
    tpu.vector_store %arg4[%c7, %c0_13], %25 {strides = array<i32>} : memref<8x16xf32, #tpu.memory_space<vmem>>, vector<1x16xf32>,
    return
  }
  func.func @transform_0(%arg0: i32) -> (i32, i32) {
    %c0_i32 = arith.constant 0 : i32
    %c0_i32_0 = arith.constant 0 : i32
    return %arg0, %c0_i32 : i32, i32
  }
  func.func @transform_1(%arg0: i32) -> (i32, i32) {
    %c0_i32 = arith.constant 0 : i32
    %c0_i32_0 = arith.constant 0 : i32
    %c0_i32_1 = arith.constant 0 : i32
    return %c0_i32, %c0_i32_0 : i32, i32
  }
  func.func @transform_2(%arg0: i32) -> (i32, i32) {
    %c0_i32 = arith.constant 0 : i32
    %c0_i32_0 = arith.constant 0 : i32
    %c0_i32_1 = arith.constant 0 : i32
    return %c0_i32, %c0_i32_0 : i32, i32
  }
  func.func @transform_3(%arg0: i32) -> (i32, i32) {
    %c0_i32 = arith.constant 0 : i32
    %c0_i32_0 = arith.constant 0 : i32
    return %c0_i32, %arg0 : i32, i32
  }
}

</mosaic_0001>

<bundles_post_ra>
// kernel: vo_pose_constrain_quaternion_decoder.1
= control target key start
LH: loop header
LB: loop body
LE: loop exit
PB: predicated region body
PF: predicated region fallthrough
CT: control target
= control target key end

     0   :  { %vm23_vm0 = vcmask 261120   ;;  %v161_v0 = vmov 0.0|0.0   ;;  %vm162_vm2 = vmmov 0   ;;  %v163_v3 = vmov 0.0   ;;  %s212_s0 = inlined_call_operand.vmem [shape: f32[16,32], index: 0, kind: input, shape index: {}]   ;;  %s213_s2 = inlined_call_operand.vmem [shape: f32[8,1], index: 2, kind: input, shape index: {}]   ;;  %s214_s3 = inlined_call_operand.vmem [shape: f32[8,16], index: 3, kind: output, shape index: {}]   ;;  %s215_s1 = inlined_call_operand.vmem [shape: f32[8,32], index: 1, kind: input, shape index: {}]  }
   0x1   :  { %150 = vmatprep.subr.bf16.mxu0 %v161_v0  ;;  %v14_v1 = vld [vmem:[%s212_s0] sm:$0xff]  ;;  %v15_v2 = vld [vmem:[%s212_s0 + $0x8] sm:$0xff]  ;;  %vm152_vm1 = vmpackc.low %vm23_vm0, %vm23_vm0  ;;  %147 = vmatprep.mubr.msk.f32.mxu0 %vm162_vm2, %v163_v3  ;;  %vm131_vm3 = vcmask 122880   ;;  %v164_v5 = vmov 0   ;;  %vm109_vm4 = vcmask 124928   ;;  %v124_v25 = vlaneseq }
   0x2   :  { %v151_v4 = vpack.c.bf16 %v15_v2, %v14_v1  ;;  %132 = vst.msk [vmem:[%s214_s3 + $0x7] sm:$0x1] %vm131_vm3, %v163_v3  ;;  %158 = vset.pattern.permute.xlu0 %v164_v5  ;;  %v17_v6 = vld [vmem:[%s213_s2] sm:$0xff]  ;;  %vm122_vm5 = vcmask 125955   ;;  %vm129_vm6 = vcmask 129028  }
   0x3   :  { %20 = vperm.xlu0 %158, %v17_v6   ;;  %v16_v7 = vld [vmem:[%s215_s1] sm:$0xff]  ;;  %v125_v26 = vshrl.u32 %v124_v25, 7 }
   0x4   :  { %153 = vmatpush3.bf16.xpose.msk.msra.mxu0 %vm152_vm1, %v151_v4 }
   0x5   :  { %v126_v27 = vsub.s32 3, %v125_v26 }
   0xb   :  { %148 = vmatmul.mubr.msk.f32.vlgmr.msra.gmra.mrb[0].mxu0 %vm23_vm0, %v16_v7 }
  0x82   :  { %v21_v8 = vpop.permute.xlu0 %20 }
  0xde   :  { %v99_v9 = vpop.f32.mrb[0].mxu0 }
  0xdf   :  { %v100_v10 = vadd.f32 %v99_v9, %v21_v8  ;;  %v149_v11 = vpop.f32.mrb[1].mxu0 }
  0xe1   :  { %v105_v12 = vmul.f32 %v100_v10, %v100_v10  ;;  %120 = vst.msk [vmem:[%s214_s3] sm:$0x7] %vm109_vm4, %v100_v10  ;;  %v103_v18 = vmax.f32 %v100_v10, 0.0 }
  0xe3   :  { %v107_v13 = vrot.slane %v105_v12, 4  ;;  %v104_v21 = vmul.f32 %v103_v18, %v103_v18 }
  0xe5   :  { %v110_v14 = vsel %vm109_vm4, %v107_v13, 0.0 }
  0xe6   :  { %v111_v15 = vrot.slane %v110_v14, 4 }
  0xe8   :  { %v112_v16 = vadd.f32 %v111_v15, %v110_v14 }
  0xea   :  { %v113_v17 = vrot.slane %v112_v16, 2 }
  0xec   :  { %v114_v19 = vadd.f32 %v113_v17, %v112_v16 }
  0xee   :  { %v115_v20 = vrot.slane %v114_v19, 1 }
  0xf0   :  { %v116_v22 = vadd.f32 %v115_v20, %v114_v19 }
  0xf2   :  { %v117_v23 = vadd.f32 %v116_v22, %v104_v21 }
  0xf4   :  { %v118_v24 = vmax.f32 %v117_v23, 1e-24 }
  0xf6   :  { %159 = vrsqrt.f32 %v118_v24 }
 0x100   :  { %v160_v28 = vpop.eup %159 }
 0x101   :  { %v121_v29 = vmul.f32 %v160_v28, %v103_v18  ;;  %v127_v30 = vrot.slane %v160_v28, %v126_v27 }
 0x103   :  { %123 = vst.msk [vmem:[%s214_s3] sm:$0x8] %vm122_vm5, %v121_v29  ;;  %v128_v31 = vmul.f32 %v127_v30, %v100_v10 }
 0x105   :  { %130 = vst.msk [vmem:[%s214_s3] sm:$0x70] %vm129_vm6, %v128_v31 }

</bundles_post_ra>
